<compile_context>
chip_gen: v6e
topology: v6e:2x2x1
jax: 0.10.0
libtpu: 0.0.40
codegen_flags: <defaults>
</compile_context>

<pallas_src>
import jax
import jax.numpy as jnp
from jax.experimental import pallas as pl
from jax.experimental.pallas import tpu as pltpu

_LANE = 128


def _round_up(n, m):
    return ((n + m - 1) // m) * m


def _mlp_kernel(x_ref, w1_ref, b1_ref, w2_ref, b2_ref, o_ref):
    # x_ref : (TB, D_in)        w1_ref : (D_in, nhF_p)   b1_ref : (1, nhF_p)
    # w2_ref: (nhF_p, C_dim)    b2_ref : (1, C_dim)      o_ref  : (TB, C_dim)
    x = x_ref[...]
    h = jnp.dot(x, w1_ref[...], preferred_element_type=jnp.float32) + b1_ref[...]
    # LeakyReLU(0.2) in f32 (matches torch semantics, incl. h == 0).
    h = jnp.where(h > 0, h, 0.2 * h)
    out = jnp.dot(h.astype(w2_ref.dtype), w2_ref[...],
                  preferred_element_type=jnp.float32) + b2_ref[...]
    o_ref[...] = out.astype(o_ref.dtype)


def prepare_params(w1, b1, w2, b2, *, use_bf16=False):
    """Pad hidden dim to a 128-lane multiple ONCE (hoisted out of forward).

    Zero padding is exact: padded hidden units have zero weight + zero bias,
    so LeakyReLU(0) == 0 and they contribute nothing to the second matmul.

    w1: (D_in, nhF), b1: (nhF,), w2: (nhF, C_dim), b2: (C_dim,)
    """
    d_in, nhf = w1.shape
    c_dim = w2.shape[1]
    nhf_p = _round_up(nhf, _LANE)
    mm_dtype = jnp.bfloat16 if use_bf16 else jnp.float32

    w1_p = jnp.zeros((d_in, nhf_p), mm_dtype).at[:, :nhf].set(w1.astype(mm_dtype))
    b1_p = jnp.zeros((1, nhf_p), jnp.float32).at[:, :nhf].set(
        b1.reshape(1, nhf).astype(jnp.float32))
    w2_p = jnp.zeros((nhf_p, c_dim), mm_dtype).at[:nhf, :].set(w2.astype(mm_dtype))
    b2_p = b2.reshape(1, c_dim).astype(jnp.float32)
    return w1_p, b1_p, w2_p, b2_p


def dis_embed_att1_forward(x, w1_p, b1_p, w2_p, b2_p, *, tb=None):
    """x: (B, S_dim + C_dim). Params from prepare_params(). Returns (B, C_dim) f32."""
    B, D_in = x.shape
    nhF_p = w1_p.shape[1]
    C_dim = w2_p.shape[1]

    # Cast x to the matmul dtype (bf16 path halves the dominant HBM stream).
    if x.dtype != w1_p.dtype:
        x = x.astype(w1_p.dtype)

    # Batch tile: multiple of 8, large enough to amortize per-grid-step
    # overhead, and <= ceil(B/2) so the grid has >= 2 steps (v7x 2-TC sharding
    # of the "parallel" axis). Working set stays ~100x under even v7x VMEM.
    if tb is None:
        tb = min(4096, _round_up(pl.cdiv(B, 2), 8))
    tb = max(8, _round_up(min(tb, _round_up(B, 8)), 8))

    grid = (pl.cdiv(B, tb),)  # ragged last tile handled by Pallas (masked store)

    # Advisory cost estimate for XLA's scheduler around the custom call.
    bytes_accessed = (
        x.size * x.dtype.itemsize
        + B * C_dim * 4
        + w1_p.size * w1_p.dtype.itemsize + w2_p.size * w2_p.dtype.itemsize
        + b1_p.size * b1_p.dtype.itemsize + b2_p.size * b2_p.dtype.itemsize)
    cost = pl.CostEstimate(
        flops=2 * B * (D_in * nhF_p + nhF_p * C_dim),
        transcendentals=0,
        bytes_accessed=bytes_accessed)

    return pl.pallas_call(
        _mlp_kernel,
        out_shape=jax.ShapeDtypeStruct((B, C_dim), jnp.float32),
        grid_spec=pltpu.PrefetchScalarGridSpec(
            num_scalar_prefetch=0,
            grid=grid,
            in_specs=[
                pl.BlockSpec((tb, D_in), lambda i: (i, 0)),      # x tile (streamed)
                pl.BlockSpec((D_in, nhF_p), lambda i: (0, 0)),   # W1 (resident)
                pl.BlockSpec((1, nhF_p), lambda i: (0, 0)),      # b1 (resident)
                pl.BlockSpec((nhF_p, C_dim), lambda i: (0, 0)),  # W2 (resident)
                pl.BlockSpec((1, C_dim), lambda i: (0, 0)),      # b2 (resident)
            ],
            # Narrow (C_dim) output block: full-array last dim, so no 16x
            # padded writeback and no wrapper slice pass.
            out_specs=pl.BlockSpec((tb, C_dim), lambda i: (i, 0)),
        ),
        compiler_params=pltpu.CompilerParams(
            dimension_semantics=("parallel",)),
        cost_estimate=cost,
    )(x, w1_p, b1_p, w2_p, b2_p)


def init_params(key, s_dim, c_dim, nhf):
    """Mirror weights_init: Linear weight ~ N(0, 0.02), bias = 0."""
    k1, k2 = jax.random.split(key)
    d_in = s_dim + c_dim
    w1 = 0.02 * jax.random.normal(k1, (d_in, nhf), dtype=jnp.float32)
    b1 = jnp.zeros((nhf,), dtype=jnp.float32)
    w2 = 0.02 * jax.random.normal(k2, (nhf, c_dim), dtype=jnp.float32)
    b2 = jnp.zeros((c_dim,), dtype=jnp.float32)
    return w1, b1, w2, b2


if __name__ == "__main__":
    # Shapes consistent with the module (opt.S_dim=24, opt.C_dim=8, opt.nhF=32).
    # B chosen so the grid has 2 steps AND the last tile is ragged (exercises
    # the masked-tail path: 300 rows -> tb=152, tiles of 152 and 148).
    S_dim, C_dim, nhF = 24, 8, 32
    B = 300

    key = jax.random.PRNGKey(0)
    kx, kp = jax.random.split(key)
    x = jax.random.normal(kx, (B, S_dim + C_dim), dtype=jnp.float32)
    w1, b1, w2, b2 = init_params(kp, S_dim, C_dim, nhF)

    # Padding / dtype prep happens once, outside the per-call forward.
    params = prepare_params(w1, b1, w2, b2, use_bf16=False)

    out = dis_embed_att1_forward(x, *params)
    out = jax.block_until_ready(out)

    # Pure-JAX reference check (f32 path -> tight tolerance).
    h_ref = x @ w1 + b1
    h_ref = jnp.where(h_ref > 0, h_ref, 0.2 * h_ref)
    ref = h_ref @ w2 + b2
    assert out.shape == (B, C_dim)
    assert jnp.allclose(out, ref, atol=1e-4, rtol=1e-4), float(
        jnp.max(jnp.abs(out - ref)))

    print("KERNEL_OK")
</pallas_src>

<mosaic_0001>
module attributes {stable_mosaic.version = 11 : i64} {
  func.func @_mlp_kernel(%arg0: i32, %arg1: memref<152x32xf32, #tpu.memory_space<vmem>>, %arg2: memref<32x128xf32, #tpu.memory_space<vmem>>, %arg3: memref<1x128xf32, #tpu.memory_space<vmem>>, %arg4: memref<128x8xf32, #tpu.memory_space<vmem>>, %arg5: memref<1x8xf32, #tpu.memory_space<vmem>>, %arg6: memref<152x8xf32, #tpu.memory_space<vmem>>) attributes {dimension_semantics = [#tpu.dimension_semantics<parallel>], iteration_bounds = array<i64: 2>, scalar_prefetch = 0 : i64, scratch_operands = 0 : i64, tpu.core_type = #tpu.core_type<tc>, window_params = [{transform_indices = @transform_0, window_bounds = array<i64: 152, 32>}, {pipeline_mode = #tpu.pipeline_mode<synchronous>, transform_indices = @transform_1, window_bounds = array<i64: 32, 128>}, {pipeline_mode = #tpu.pipeline_mode<synchronous>, transform_indices = @transform_2, window_bounds = array<i64: 1, 128>}, {pipeline_mode = #tpu.pipeline_mode<synchronous>, transform_indices = @transform_3, window_bounds = array<i64: 128, 8>}, {pipeline_mode = #tpu.pipeline_mode<synchronous>, transform_indices = @transform_4, window_bounds = array<i64: 1, 8>}, {transform_indices = @transform_5, window_bounds = array<i64: 152, 8>}]} {
    %c0 = arith.constant 0 : index
    %c0_0 = arith.constant 0 : index
    %0 = vector.load %arg1[%c0, %c0_0] : memref<152x32xf32, #tpu.memory_space<vmem>>, vector<152x32xf32>
    %c0_1 = arith.constant 0 : index
    %c0_2 = arith.constant 0 : index
    %1 = vector.load %arg2[%c0_1, %c0_2] : memref<32x128xf32, #tpu.memory_space<vmem>>, vector<32x128xf32>
    %cst = arith.constant dense<0.000000e+00> : vector<152x128xf32>
    %2 = tpu.matmul %0, %1, %cst {dimension_numbers = #tpu.dot_dimension_numbers<[1], [0], [0], [1], [0, 0, 1, 1], [], []>} : vector<152x32xf32>, vector<32x128xf32>, vector<152x128xf32> -> vector<152x128xf32>
    %c0_3 = arith.constant 0 : index
    %c0_4 = arith.constant 0 : index
    %3 = vector.load %arg3[%c0_3, %c0_4] : memref<1x128xf32, #tpu.memory_space<vmem>>, vector<1x128xf32>
    %4 = vector.broadcast %3 : vector<1x128xf32> to vector<152x128xf32>
    %5 = arith.addf %2, %4 : vector<152x128xf32>
    %cst_5 = arith.constant 0.000000e+00 : f32
    %6 = vector.broadcast %cst_5 : f32 to vector<152x128xf32>
    %7 = arith.cmpf ogt, %5, %6 : vector<152x128xf32>
    %cst_6 = arith.constant 2.000000e-01 : f32
    %8 = vector.broadcast %cst_6 : f32 to vector<152x128xf32>
    %9 = arith.mulf %8, %5 : vector<152x128xf32>
    %10 = arith.select %7, %5, %9 : vector<152x128xi1>, vector<152x128xf32>
    %c0_7 = arith.constant 0 : index
    %c0_8 = arith.constant 0 : index
    %11 = vector.load %arg4[%c0_7, %c0_8] : memref<128x8xf32, #tpu.memory_space<vmem>>, vector<128x8xf32>
    %cst_9 = arith.constant dense<0.000000e+00> : vector<152x8xf32>
    %12 = tpu.matmul %10, %11, %cst_9 {dimension_numbers = #tpu.dot_dimension_numbers<[1], [0], [0], [1], [0, 0, 1, 1], [], []>} : vector<152x128xf32>, vector<128x8xf32>, vector<152x8xf32> -> vector<152x8xf32>
    %c0_10 = arith.constant 0 : index
    %c0_11 = arith.constant 0 : index
    %13 = vector.load %arg5[%c0_10, %c0_11] : memref<1x8xf32, #tpu.memory_space<vmem>>, vector<1x8xf32>
    %14 = vector.broadcast %13 : vector<1x8xf32> to vector<152x8xf32>
    %15 = arith.addf %12, %14 : vector<152x8xf32>
    %c0_12 = arith.constant 0 : index
    %c0_13 = arith.constant 0 : index
    %16 = vector.load %arg6[%c0_12, %c0_13] : memref<152x8xf32, #tpu.memory_space<vmem>>, vector<152x8xf32>
    tpu.vector_store %arg6[%c0_12, %c0_13], %15 {strides = array<i32>} : memref<152x8xf32, #tpu.memory_space<vmem>>, vector<152x8xf32>,
    return
  }
  func.func @transform_0(%arg0: i32) -> (i32, i32) {
    %c0_i32 = arith.constant 0 : i32
    %c0_i32_0 = arith.constant 0 : i32
    return %arg0, %c0_i32 : i32, i32
  }
  func.func @transform_1(%arg0: i32) -> (i32, i32) {
    %c0_i32 = arith.constant 0 : i32
    %c0_i32_0 = arith.constant 0 : i32
    %c0_i32_1 = arith.constant 0 : i32
    return %c0_i32, %c0_i32_0 : i32, i32
  }
  func.func @transform_2(%arg0: i32) -> (i32, i32) {
    %c0_i32 = arith.constant 0 : i32
    %c0_i32_0 = arith.constant 0 : i32
    %c0_i32_1 = arith.constant 0 : i32
    return %c0_i32, %c0_i32_0 : i32, i32
  }
  func.func @transform_3(%arg0: i32) -> (i32, i32) {
    %c0_i32 = arith.constant 0 : i32
    %c0_i32_0 = arith.constant 0 : i32
    %c0_i32_1 = arith.constant 0 : i32
    return %c0_i32, %c0_i32_0 : i32, i32
  }
  func.func @transform_4(%arg0: i32) -> (i32, i32) {
    %c0_i32 = arith.constant 0 : i32
    %c0_i32_0 = arith.constant 0 : i32
    %c0_i32_1 = arith.constant 0 : i32
    return %c0_i32, %c0_i32_0 : i32, i32
  }
  func.func @transform_5(%arg0: i32) -> (i32, i32) {
    %c0_i32 = arith.constant 0 : i32
    %c0_i32_0 = arith.constant 0 : i32
    return %arg0, %c0_i32 : i32, i32
  }
}

</mosaic_0001>

<bundles_post_ra>
// kernel: tpu_custom_call.1
= control target key start
LH: loop header
LB: loop body
LE: loop exit
PB: predicated region body
PF: predicated region fallthrough
CT: control target
= control target key end

     0   :  { %s1116_s18 = smov 0   ;;  %s1440_s0 = inlined_call_operand.vmem [shape: f32[300,32], index: 0, kind: input, shape index: {}]   ;;  %s1441_s1 = inlined_call_operand.vmem [shape: f32[32,128], index: 1, kind: input, shape index: {}]   ;;  %s1442_s2 = inlined_call_operand.vmem [shape: f32[1,128], index: 2, kind: input, shape index: {}]   ;;  %s1443_s3 = inlined_call_operand.vmem [shape: f32[128,8], index: 3, kind: input, shape index: {}]   ;;  %s1444_s4 = inlined_call_operand.vmem [shape: f32[1,8], index: 4, kind: input, shape index: {}]   ;;  %s1445_s5 = inlined_call_operand.vmem [shape: f32[300,8], index: 5, kind: output, shape index: {}]  }
   0x1 LB: > { %s792_s19 = sadd.s32 4294967295, %s1082_s18   ;;  %p796_p0 = scmp.ge.s32.totalorder %s1082_s18, 1  ;;  %s1082_s18 = sphi %s1116_s18, %s15_s18  }
   0x2   : > { %p188_p1 = scmp.lt.s32.totalorder %s1082_s18, 3 }
   0x4   : > { %p189_p2 = pnand %p796_p0, %p188_p1 }
   0x5   : > { %s216_s22 = smul.u32 (!%p189_p2), 19, %s792_s19 }
   0x6   : > { %192 = sbr.rel (%p189_p2) target bundleno = 486 (0x1e6), region = 40 }
   0x7   : > { %p217_p3 = scmp.lt.s32.totalorder (!%p189_p2), %s216_s22, 37 }
   0xb   : > { %v250_v0 = vld [vmem:[%s1441_s1 + $0x18] sm:$0xff]  ;;  %v1084_v1 = vmov 0.0   ;;  %v249_v2 = vld [vmem:[%s1441_s1 + $0x10] sm:$0xff]  ;;  %vm1085_vm0 = vmmov 0   ;;  %v248_v4 = vld [vmem:[%s1441_s1 + $0x8] sm:$0xff]  ;;  %s1447_s22 = smov (!%p217_p3, %s216_s22), 37 }
   0xc   : > { %880 = vmatprep.subr.mxu0 %v1084_v1  ;;  %888 = vmatprep.mubr.msk.f32.mxu0 %vm1085_vm0, %v1084_v1  ;;  %v548_v3 = vld [vmem:[%s1443_s3 + $0x78] sm:$0xff]  ;;  %v547_v5 = vld [vmem:[%s1443_s3 + $0x70] sm:$0xff]  ;;  %v247_v6 = vld [vmem:[%s1441_s1] sm:$0xff]  ;;  %s797_s8 = sshll.u32 %s1447_s22, 3  ;;  %vm258_vm1 = vcmask 261120  }
   0xd   : > { %881 = vmatpush3.msra.mxu0 %v250_v0  ;;  %1034 = vmatprep.subr.mxu1 %v1084_v1  ;;  %v546_v7 = vld [vmem:[%s1443_s3 + $0x68] sm:$0xff]  ;;  %s1162_s13 = scalar_lea.vmem %s1440_s0, %s797_s8  ;;  %v545_v10 = vld [vmem:[%s1443_s3 + $0x60] sm:$0xff]  ;;  %v544_v12 = vld [vmem:[%s1443_s3 + $0x58] sm:$0xff]  ;;  %s1378_s26 = scalar_lea.vmem %s1445_s5, %s797_s8 }
   0xe   : > { %882 = vmatprep.subr.mxu0 %v1084_v1  ;;  %1050 = vmatpush3.msra.mxu1 %v548_v3  ;;  %v228_v8 = vld [vmem:[%s1162_s13] sm:$0xff]  ;;  %v229_v9 = vld [vmem:[%s1162_s13 + $0x8] sm:$0xff]  ;;  %v230_v11 = vld [vmem:[%s1162_s13 + $0x10] sm:$0xff] }
   0xf   : > { %883 = vmatpush3.msra.mxu0 %v249_v2  ;;  %1035 = vmatprep.subr.mxu1 %v1084_v1  ;;  %v543_v13 = vld [vmem:[%s1443_s3 + $0x50] sm:$0xff]  ;;  %v231_v14 = vld [vmem:[%s1162_s13 + $0x18] sm:$0xff]  ;;  %v542_v15 = vld [vmem:[%s1443_s3 + $0x48] sm:$0xff] }
  0x10   : > { %884 = vmatprep.subr.mxu0 %v1084_v1  ;;  %1051 = vmatpush3.msra.mxu1 %v547_v5  ;;  %v541_v16 = vld [vmem:[%s1443_s3 + $0x40] sm:$0xff]  ;;  %v540_v18 = vld [vmem:[%s1443_s3 + $0x38] sm:$0xff]  ;;  %v539_v19 = vld [vmem:[%s1443_s3 + $0x30] sm:$0xff] }
  0x11   : > { %885 = vmatpush3.msra.mxu0 %v248_v4  ;;  %1036 = vmatprep.subr.mxu1 %v1084_v1  ;;  %v232_v17 = vld [vmem:[%s1162_s13 + $0x20] sm:$0xff]  ;;  %v233_v20 = vld [vmem:[%s1162_s13 + $0x28] sm:$0xff]  ;;  %v234_v23 = vld [vmem:[%s1162_s13 + $0x30] sm:$0xff] }
  0x12   : > { %886 = vmatprep.subr.mxu0 %v1084_v1  ;;  %1052 = vmatpush3.msra.mxu1 %v546_v7  ;;  %v538_v21 = vld [vmem:[%s1443_s3 + $0x28] sm:$0xff]  ;;  %v537_v22 = vld [vmem:[%s1443_s3 + $0x20] sm:$0xff]  ;;  %v536_v24 = vld [vmem:[%s1443_s3 + $0x18] sm:$0xff] }
  0x13   : > { %887 = vmatpush3.msra.mxu0 %v247_v6  ;;  %1037 = vmatprep.subr.mxu1 %v1084_v1  ;;  %v235_v25 = vld [vmem:[%s1162_s13 + $0x38] sm:$0xff]  ;;  %v236_v26 = vld [vmem:[%s1162_s13 + $0x40] sm:$0xff]  ;;  %v237_v27 = vld [vmem:[%s1162_s13 + $0x48] sm:$0xff] }
  0x14   : > { %889 = vmatmul.mubr.msk.f32.vlgmr.msra.gmra.mxu0 %vm258_vm1, %v228_v8  ;;  %945 = vmatprep.subr.mxu0 %v1084_v1  ;;  %v238_v28 = vld [vmem:[%s1162_s13 + $0x50] sm:$0xff]  ;;  %v239_v29 = vld [vmem:[%s1162_s13 + $0x58] sm:$0xff]  ;;  %v240_v30 = vld [vmem:[%s1162_s13 + $0x60] sm:$0xff] }
  0x15   : > { %891 = vmatprep.mubr.msk.f32.mxu0 %vm1085_vm0, %v1084_v1  ;;  %946 = vmatpush3.msra.mxu0 %v548_v3  ;;  %v241_v31 = vld [vmem:[%s1162_s13 + $0x68] sm:$0xff]  ;;  %v242_v32 = vld [vmem:[%s1162_s13 + $0x70] sm:$0xff]  ;;  %v243_v33 = vld [vmem:[%s1162_s13 + $0x78] sm:$0xff] }
  0x16   : > { %947 = vmatprep.subr.mxu0 %v1084_v1  ;;  %1053 = vmatpush3.msra.mxu1 %v545_v10  ;;  %v244_v34 = vld [vmem:[%s1162_s13 + $0x80] sm:$0xff]  ;;  %v535_v35 = vld [vmem:[%s1443_s3 + $0x10] sm:$0xff]  ;;  %v245_v36 = vld [vmem:[%s1162_s13 + $0x88] sm:$0xff] }
  0x17   : > { %948 = vmatpush3.msra.mxu0 %v547_v5  ;;  %1038 = vmatprep.subr.mxu1 %v1084_v1  ;;  %v534_v37 = vld [vmem:[%s1443_s3 + $0x8] sm:$0xff]  ;;  %v533_v38 = vld [vmem:[%s1443_s3] sm:$0xff]  ;;  %v246_v39 = vld [vmem:[%s1162_s13 + $0x90] sm:$0xff] }
  0x18   : > { %892 = vmatmul.mubr.msk.f32.gmra.mxu0 %vm258_vm1, %v229_v9  ;;  %949 = vmatprep.subr.mxu0 %v1084_v1  ;;  %v1313_v40 = vld [vmem:[%s1442_s2] ss:$0 sm:$0xff] }
  0x19   : > { %894 = vmatprep.mubr.msk.f32.mxu0 %vm1085_vm0, %v1084_v1  ;;  %950 = vmatpush3.msra.mxu0 %v546_v7 }
  0x1a   : > { %951 = vmatprep.subr.mxu0 %v1084_v1  ;;  %1054 = vmatpush3.msra.mxu1 %v544_v12 }
  0x1b   : > { %952 = vmatpush3.msra.mxu0 %v545_v10  ;;  %1039 = vmatprep.subr.mxu1 %v1084_v1 }
  0x1c   : > { %895 = vmatmul.mubr.msk.f32.gmra.mxu0 %vm258_vm1, %v230_v11  ;;  %953 = vmatprep.subr.mxu0 %v1084_v1 }
  0x1d   : > { %897 = vmatprep.mubr.msk.f32.mxu0 %vm1085_vm0, %v1084_v1  ;;  %954 = vmatpush3.msra.mxu0 %v544_v12 }
  0x1e   : > { %955 = vmatprep.subr.mxu0 %v1084_v1  ;;  %1055 = vmatpush3.msra.mxu1 %v543_v13 }
  0x1f   : > { %956 = vmatpush3.msra.mxu0 %v543_v13  ;;  %1040 = vmatprep.subr.mxu1 %v1084_v1 }
  0x20   : > { %898 = vmatmul.mubr.msk.f32.gmra.mxu0 %vm258_vm1, %v231_v14  ;;  %957 = vmatprep.subr.mxu0 %v1084_v1 }
  0x21   : > { %900 = vmatprep.mubr.msk.f32.mxu0 %vm1085_vm0, %v1084_v1  ;;  %958 = vmatpush3.msra.mxu0 %v542_v15 }
  0x22   : > { %959 = vmatprep.subr.mxu0 %v1084_v1  ;;  %1056 = vmatpush3.msra.mxu1 %v542_v15 }
  0x23   : > { %960 = vmatpush3.msra.mxu0 %v541_v16  ;;  %1041 = vmatprep.subr.mxu1 %v1084_v1 }
  0x24   : > { %901 = vmatmul.mubr.msk.f32.gmra.mxu0 %vm258_vm1, %v232_v17  ;;  %961 = vmatprep.subr.mxu0 %v1084_v1 }
  0x25   : > { %903 = vmatprep.mubr.msk.f32.mxu0 %vm1085_vm0, %v1084_v1  ;;  %962 = vmatpush3.msra.mxu0 %v540_v18 }
  0x26   : > { %963 = vmatprep.subr.mxu0 %v1084_v1  ;;  %1057 = vmatpush3.msra.mxu1 %v541_v16 }
  0x27   : > { %964 = vmatpush3.msra.mxu0 %v539_v19  ;;  %1042 = vmatprep.subr.mxu1 %v1084_v1 }
  0x28   : > { %904 = vmatmul.mubr.msk.f32.gmra.mxu0 %vm258_vm1, %v233_v20  ;;  %965 = vmatprep.subr.mxu0 %v1084_v1 }
  0x29   : > { %906 = vmatprep.mubr.msk.f32.mxu0 %vm1085_vm0, %v1084_v1  ;;  %966 = vmatpush3.msra.mxu0 %v538_v21 }
  0x2a   : > { %967 = vmatprep.subr.mxu0 %v1084_v1  ;;  %1058 = vmatpush3.msra.mxu1 %v540_v18 }
  0x2b   : > { %968 = vmatpush3.msra.mxu0 %v537_v22  ;;  %1043 = vmatprep.subr.mxu1 %v1084_v1 }
  0x2c   : > { %907 = vmatmul.mubr.msk.f32.gmra.mxu0 %vm258_vm1, %v234_v23  ;;  %969 = vmatprep.subr.mxu0 %v1084_v1 }
  0x2d   : > { %909 = vmatprep.mubr.msk.f32.mxu0 %vm1085_vm0, %v1084_v1  ;;  %970 = vmatpush3.msra.mxu0 %v536_v24 }
  0x2e   : > { %971 = vmatprep.subr.mxu0 %v1084_v1  ;;  %1059 = vmatpush3.msra.mxu1 %v539_v19 }
  0x2f   : > { %1044 = vmatprep.subr.mxu1 %v1084_v1  ;;  %986 = vmatprep.mubr.msk.f32.mxu1 %vm1085_vm0, %v1084_v1 }
  0x30   : > { %910 = vmatmul.mubr.msk.f32.gmra.mxu0 %vm258_vm1, %v235_v25  ;;  %1060 = vmatpush3.msra.mxu1 %v538_v21 }
  0x31   : > { %912 = vmatprep.mubr.msk.f32.mxu0 %vm1085_vm0, %v1084_v1  ;;  %1045 = vmatprep.subr.mxu1 %v1084_v1 }
  0x32   : > { %1061 = vmatpush3.msra.mxu1 %v537_v22  ;;  %972 = vmatpush3.msra.mxu0 %v535_v35 }
  0x33   : > { %1046 = vmatprep.subr.mxu1 %v1084_v1  ;;  %973 = vmatprep.subr.mxu0 %v1084_v1 }
  0x34   : > { %913 = vmatmul.mubr.msk.f32.gmra.mxu0 %vm258_vm1, %v236_v26  ;;  %1062 = vmatpush3.msra.mxu1 %v536_v24 }
  0x35   : > { %915 = vmatprep.mubr.msk.f32.mxu0 %vm1085_vm0, %v1084_v1  ;;  %1047 = vmatprep.subr.mxu1 %v1084_v1 }
  0x36   : > { %1063 = vmatpush3.msra.mxu1 %v535_v35  ;;  %974 = vmatpush3.msra.mxu0 %v534_v37 }
  0x37   : > { %1048 = vmatprep.subr.mxu1 %v1084_v1  ;;  %975 = vmatprep.subr.mxu0 %v1084_v1 }
  0x38   : > { %916 = vmatmul.mubr.msk.f32.gmra.mxu0 %vm258_vm1, %v237_v27  ;;  %1064 = vmatpush3.msra.mxu1 %v534_v37 }
  0x39   : > { %918 = vmatprep.mubr.msk.f32.mxu0 %vm1085_vm0, %v1084_v1  ;;  %976 = vmatpush3.msra.mxu0 %v533_v38 }
  0x3a   : > { %1049 = vmatprep.subr.mxu1 %v1084_v1 }
  0x3b   : > { %1065 = vmatpush3.msra.mxu1 %v533_v38 }
  0x3c   : > { %919 = vmatmul.mubr.msk.f32.gmra.mxu0 %vm258_vm1, %v238_v28 }
  0x3d   : > { %921 = vmatprep.mubr.msk.f32.mxu0 %vm1085_vm0, %v1084_v1 }
  0x40   : > { %922 = vmatmul.mubr.msk.f32.gmra.mxu0 %vm258_vm1, %v239_v29 }
  0x41   : > { %924 = vmatprep.mubr.msk.f32.mxu0 %vm1085_vm0, %v1084_v1 }
  0x44   : > { %925 = vmatmul.mubr.msk.f32.gmra.mxu0 %vm258_vm1, %v240_v30 }
  0x45   : > { %927 = vmatprep.mubr.msk.f32.mxu0 %vm1085_vm0, %v1084_v1 }
  0x48   : > { %928 = vmatmul.mubr.msk.f32.gmra.mxu0 %vm258_vm1, %v241_v31 }
  0x49   : > { %930 = vmatprep.mubr.msk.f32.mxu0 %vm1085_vm0, %v1084_v1 }
  0x4c   : > { %931 = vmatmul.mubr.msk.f32.gmra.mxu0 %vm258_vm1, %v242_v32 }
  0x4d   : > { %933 = vmatprep.mubr.msk.f32.mxu0 %vm1085_vm0, %v1084_v1 }
  0x50   : > { %934 = vmatmul.mubr.msk.f32.gmra.mxu0 %vm258_vm1, %v243_v33 }
  0x51   : > { %936 = vmatprep.mubr.msk.f32.mxu0 %vm1085_vm0, %v1084_v1 }
  0x54   : > { %937 = vmatmul.mubr.msk.f32.gmra.mxu0 %vm258_vm1, %v244_v34 }
  0x55   : > { %939 = vmatprep.mubr.msk.f32.mxu0 %vm1085_vm0, %v1084_v1 }
  0x58   : > { %940 = vmatmul.mubr.msk.f32.gmra.mxu0 %vm258_vm1, %v245_v36 }
  0x59   : > { %942 = vmatprep.mubr.msk.f32.mxu0 %vm1085_vm0, %v1084_v1 }
  0x5c   : > { %943 = vmatmul.mubr.msk.f32.gmra.mxu0 %vm258_vm1, %v246_v39 }
  0x5d   : > { %977 = vmatprep.mubr.msk.f32.mxu0 %vm1085_vm0, %v1084_v1 }
  0xd4   : > { %v382_v41 = vpop.f32.mrf.mxu0 }
  0xd5   : > { %v383_v42 = vadd.f32 %v1313_v40, %v382_v41 }
  0xd6   : > { %v890_v43 = vpop.f32.mrf.mxu0 }
  0xd7   : > { %vm476_vm2 = vcmp.gt.f32.partialorder %v383_v42, 0.0  ;;  %v495_v44 = vmul.f32 0.2, %v383_v42 }
  0xd8   : > { %v387_v45 = vpop.f32.mrf.mxu0 }
  0xd9   : > { %v514_v46 = vsel %vm476_vm2, %v383_v42, %v495_v44  ;;  %v388_v47 = vadd.f32 %v1313_v40, %v387_v45 }
  0xda   : > { %v893_v48 = vpop.f32.mrf.mxu0  ;;  %978 = vmatmul.mubr.f32.vlgmr.msra.gmra.mxu0 %v514_v46 }
  0xdb   : > { %v496_v49 = vmul.f32 0.2, %v388_v47  ;;  %980 = vmatprep.mubr.msk.f32.mxu0 %vm1085_vm0, %v1084_v1  ;;  %vm477_vm3 = vcmp.gt.f32.partialorder %v388_v47, 0.0 }
  0xdc   : > { %v392_v50 = vpop.f32.mrf.mxu0 }
  0xdd   : > { %v393_v51 = vadd.f32 %v1313_v40, %v392_v50  ;;  %v515_v52 = vsel %vm477_vm3, %v388_v47, %v496_v49 }
  0xde   : > { %v896_v53 = vpop.f32.mrf.mxu0  ;;  %981 = vmatmul.mubr.f32.gmra.mxu0 %v515_v52 }
  0xdf   : > { %v497_v54 = vmul.f32 0.2, %v393_v51  ;;  %983 = vmatprep.mubr.msk.f32.mxu0 %vm1085_vm0, %v1084_v1  ;;  %vm478_vm4 = vcmp.gt.f32.partialorder %v393_v51, 0.0 }
  0xe0   : > { %v397_v55 = vpop.f32.mrf.mxu0 }
  0xe1   : > { %v398_v56 = vadd.f32 %v1313_v40, %v397_v55  ;;  %v516_v57 = vsel %vm478_vm4, %v393_v51, %v497_v54 }
  0xe2   : > { %v899_v58 = vpop.f32.mrf.mxu0  ;;  %984 = vmatmul.mubr.f32.gmra.mxu0 %v516_v57 }
  0xe3   : > { %v498_v59 = vmul.f32 0.2, %v398_v56  ;;  %vm479_vm5 = vcmp.gt.f32.partialorder %v398_v56, 0.0 }
  0xe4   : > { %v402_v60 = vpop.f32.mrf.mxu0 }
  0xe5   : > { %v403_v61 = vadd.f32 %v1313_v40, %v402_v60  ;;  %v517_v62 = vsel %vm479_vm5, %v398_v56, %v498_v59 }
  0xe6   : > { %v902_v63 = vpop.f32.mrf.mxu0  ;;  %987 = vmatmul.mubr.f32.vlgmr.msra.gmra.mxu1 %v517_v62 }
  0xe7   : > { %v499_v0 = vmul.f32 0.2, %v403_v61  ;;  %989 = vmatprep.mubr.msk.f32.mxu1 %vm1085_vm0, %v1084_v1  ;;  %vm480_vm6 = vcmp.gt.f32.partialorder %v403_v61, 0.0 }
  0xe8   : > { %v407_v2 = vpop.f32.mrf.mxu0 }
  0xe9   : > { %v408_v3 = vadd.f32 %v1313_v40, %v407_v2  ;;  %v518_v4 = vsel %vm480_vm6, %v403_v61, %v499_v0 }
  0xea   : > { %v905_v5 = vpop.f32.mrf.mxu0  ;;  %990 = vmatmul.mubr.f32.gmra.mxu1 %v518_v4 }
  0xeb   : > { %v500_v6 = vmul.f32 0.2, %v408_v3  ;;  %992 = vmatprep.mubr.msk.f32.mxu1 %vm1085_vm0, %v1084_v1  ;;  %vm481_vm7 = vcmp.gt.f32.partialorder %v408_v3, 0.0 }
  0xec   : > { %v412_v7 = vpop.f32.mrf.mxu0 }
  0xed   : > { %v413_v8 = vadd.f32 %v1313_v40, %v412_v7  ;;  %v519_v9 = vsel %vm481_vm7, %v408_v3, %v500_v6 }
  0xee   : > { %v908_v10 = vpop.f32.mrf.mxu0  ;;  %993 = vmatmul.mubr.f32.gmra.mxu1 %v519_v9 }
  0xef   : > { %v501_v11 = vmul.f32 0.2, %v413_v8  ;;  %995 = vmatprep.mubr.msk.f32.mxu1 %vm1085_vm0, %v1084_v1  ;;  %vm482_vm8 = vcmp.gt.f32.partialorder %v413_v8, 0.0 }
  0xf0   : > { %v417_v12 = vpop.f32.mrf.mxu0 }
  0xf1   : > { %v418_v13 = vadd.f32 %v1313_v40, %v417_v12  ;;  %v520_v14 = vsel %vm482_vm8, %v413_v8, %v501_v11  ;;  %v1371_v11 = vld [vmem:[%s1444_s4] ss:$0 sm:$0xff] }
  0xf2   : > { %v911_v15 = vpop.f32.mrf.mxu0  ;;  %996 = vmatmul.mubr.f32.gmra.mxu1 %v520_v14 }
  0xf3   : > { %v502_v16 = vmul.f32 0.2, %v418_v13  ;;  %998 = vmatprep.mubr.msk.f32.mxu1 %vm1085_vm0, %v1084_v1  ;;  %vm483_vm9 = vcmp.gt.f32.partialorder %v418_v13, 0.0 }
  0xf4   : > { %v422_v17 = vpop.f32.mrf.mxu0 }
  0xf5   : > { %v423_v18 = vadd.f32 %v1313_v40, %v422_v17  ;;  %v521_v19 = vsel %vm483_vm9, %v418_v13, %v502_v16 }
  0xf6   : > { %v914_v20 = vpop.f32.mrf.mxu0  ;;  %999 = vmatmul.mubr.f32.gmra.mxu1 %v521_v19 }
  0xf7   : > { %v503_v21 = vmul.f32 0.2, %v423_v18  ;;  %1001 = vmatprep.mubr.msk.f32.mxu1 %vm1085_vm0, %v1084_v1  ;;  %vm484_vm10 = vcmp.gt.f32.partialorder %v423_v18, 0.0 }
  0xf8   : > { %v427_v22 = vpop.f32.mrf.mxu0 }
  0xf9   : > { %v428_v23 = vadd.f32 %v1313_v40, %v427_v22  ;;  %v522_v24 = vsel %vm484_vm10, %v423_v18, %v503_v21 }
  0xfa   : > { %v917_v25 = vpop.f32.mrf.mxu0  ;;  %1002 = vmatmul.mubr.f32.gmra.mxu1 %v522_v24 }
  0xfb   : > { %v504_v26 = vmul.f32 0.2, %v428_v23  ;;  %1004 = vmatprep.mubr.msk.f32.mxu1 %vm1085_vm0, %v1084_v1  ;;  %vm485_vm11 = vcmp.gt.f32.partialorder %v428_v23, 0.0 }
  0xfc   : > { %v432_v27 = vpop.f32.mrf.mxu0 }
  0xfd   : > { %v433_v28 = vadd.f32 %v1313_v40, %v432_v27  ;;  %v523_v29 = vsel %vm485_vm11, %v428_v23, %v504_v26 }
  0xfe   : > { %v920_v30 = vpop.f32.mrf.mxu0  ;;  %1005 = vmatmul.mubr.f32.gmra.mxu1 %v523_v29 }
  0xff   : > { %v505_v31 = vmul.f32 0.2, %v433_v28  ;;  %1007 = vmatprep.mubr.msk.f32.mxu1 %vm1085_vm0, %v1084_v1  ;;  %vm486_vm12 = vcmp.gt.f32.partialorder %v433_v28, 0.0 }
 0x100   : > { %v437_v32 = vpop.f32.mrf.mxu0 }
 0x101   : > { %v438_v33 = vadd.f32 %v1313_v40, %v437_v32  ;;  %v524_v34 = vsel %vm486_vm12, %v433_v28, %v505_v31 }
 0x102   : > { %v923_v35 = vpop.f32.mrf.mxu0  ;;  %1008 = vmatmul.mubr.f32.gmra.mxu1 %v524_v34 }
 0x103   : > { %v506_v36 = vmul.f32 0.2, %v438_v33  ;;  %1010 = vmatprep.mubr.msk.f32.mxu1 %vm1085_vm0, %v1084_v1  ;;  %vm487_vm13 = vcmp.gt.f32.partialorder %v438_v33, 0.0 }
 0x104   : > { %v442_v37 = vpop.f32.mrf.mxu0 }
 0x105   : > { %v443_v38 = vadd.f32 %v1313_v40, %v442_v37  ;;  %v525_v39 = vsel %vm487_vm13, %v438_v33, %v506_v36 }
 0x106   : > { %v926_v41 = vpop.f32.mrf.mxu0  ;;  %1011 = vmatmul.mubr.f32.gmra.mxu1 %v525_v39 }
 0x107   : > { %v507_v42 = vmul.f32 0.2, %v443_v38  ;;  %1013 = vmatprep.mubr.msk.f32.mxu1 %vm1085_vm0, %v1084_v1  ;;  %vm488_vm14 = vcmp.gt.f32.partialorder %v443_v38, 0.0 }
 0x108   : > { %v447_v43 = vpop.f32.mrf.mxu0 }
 0x109   : > { %v448_v44 = vadd.f32 %v1313_v40, %v447_v43  ;;  %v526_v45 = vsel %vm488_vm14, %v443_v38, %v507_v42 }
 0x10a   : > { %v929_v46 = vpop.f32.mrf.mxu0  ;;  %1014 = vmatmul.mubr.f32.gmra.mxu1 %v526_v45 }
 0x10b   : > { %v508_v47 = vmul.f32 0.2, %v448_v44  ;;  %1016 = vmatprep.mubr.msk.f32.mxu1 %vm1085_vm0, %v1084_v1  ;;  %vm489_vm15 = vcmp.gt.f32.partialorder %v448_v44, 0.0 }
 0x10c   : > { %v452_v48 = vpop.f32.mrf.mxu0 }
 0x10d   : > { %v453_v49 = vadd.f32 %v1313_v40, %v452_v48  ;;  %v527_v50 = vsel %vm489_vm15, %v448_v44, %v508_v47 }
 0x10e   : > { %v932_v51 = vpop.f32.mrf.mxu0  ;;  %1017 = vmatmul.mubr.f32.gmra.mxu1 %v527_v50 }
 0x10f   : > { %v509_v52 = vmul.f32 0.2, %v453_v49  ;;  %1019 = vmatprep.mubr.msk.f32.mxu1 %vm1085_vm0, %v1084_v1  ;;  %vm490_vm1 = vcmp.gt.f32.partialorder %v453_v49, 0.0 }
 0x110   : > { %v457_v53 = vpop.f32.mrf.mxu0 }
 0x111   : > { %v458_v54 = vadd.f32 %v1313_v40, %v457_v53  ;;  %v528_v55 = vsel %vm490_vm1, %v453_v49, %v509_v52 }
 0x112   : > { %v935_v56 = vpop.f32.mrf.mxu0  ;;  %1020 = vmatmul.mubr.f32.gmra.mxu1 %v528_v55 }
 0x113   : > { %v510_v57 = vmul.f32 0.2, %v458_v54  ;;  %1022 = vmatprep.mubr.msk.f32.mxu1 %vm1085_vm0, %v1084_v1  ;;  %vm491_vm2 = vcmp.gt.f32.partialorder %v458_v54, 0.0 }
 0x114   : > { %v462_v58 = vpop.f32.mrf.mxu0 }
 0x115   : > { %v463_v59 = vadd.f32 %v1313_v40, %v462_v58  ;;  %v529_v60 = vsel %vm491_vm2, %v458_v54, %v510_v57 }
 0x116   : > { %v938_v61 = vpop.f32.mrf.mxu0  ;;  %1023 = vmatmul.mubr.f32.gmra.mxu1 %v529_v60 }
 0x117   : > { %v511_v62 = vmul.f32 0.2, %v463_v59  ;;  %1025 = vmatprep.mubr.msk.f32.mxu1 %vm1085_vm0, %v1084_v1  ;;  %vm492_vm3 = vcmp.gt.f32.partialorder %v463_v59, 0.0 }
 0x118   : > { %v467_v63 = vpop.f32.mrf.mxu0 }
 0x119   : > { %v468_v0 = vadd.f32 %v1313_v40, %v467_v63  ;;  %v530_v2 = vsel %vm492_vm3, %v463_v59, %v511_v62 }
 0x11a   : > { %v941_v3 = vpop.f32.mrf.mxu0  ;;  %1026 = vmatmul.mubr.f32.gmra.mxu1 %v530_v2 }
 0x11b   : > { %v512_v4 = vmul.f32 0.2, %v468_v0  ;;  %1028 = vmatprep.mubr.msk.f32.mxu1 %vm1085_vm0, %v1084_v1  ;;  %vm493_vm4 = vcmp.gt.f32.partialorder %v468_v0, 0.0 }
 0x11c   : > { %v472_v5 = vpop.f32.mrf.mxu0 }
 0x11d   : > { %v473_v6 = vadd.f32 %v1313_v40, %v472_v5  ;;  %v531_v7 = vsel %vm493_vm4, %v468_v0, %v512_v4 }
 0x11e   : > { %v944_v8 = vpop.f32.mrf.mxu0  ;;  %1029 = vmatmul.mubr.f32.gmra.mxu1 %v531_v7 }
 0x11f   : > { %v513_v9 = vmul.f32 0.2, %v473_v6  ;;  %1031 = vmatprep.mubr.msk.f32.mxu1 %vm1085_vm0, %v1084_v1  ;;  %vm494_vm5 = vcmp.gt.f32.partialorder %v473_v6, 0.0  ;;  %vm716_vm0 = vcmask 64512  }
 0x121   : > { %v532_v10 = vsel %vm494_vm5, %v473_v6, %v513_v9 }
 0x122   : > { %1032 = vmatmul.mubr.f32.gmra.mxu1 %v532_v10 }
 0x19a   : > { %v622_v40 = vpop.f32.mrf.mxu0 }
 0x19b   : > { %v623_v1 = vadd.f32 %v1371_v11, %v622_v40 }
 0x19c   : > { %v979_v12 = vpop.f32.mrf.mxu0 }
 0x19d   : > { %717 = vst.msk [vmem:[%s1378_s26] sm:$0xff] %vm716_vm0, %v623_v1 }
 0x19e   : > { %v627_v13 = vpop.f32.mrf.mxu0 }
 0x19f   : > { %v628_v14 = vadd.f32 %v1371_v11, %v627_v13 }
 0x1a0   : > { %v982_v15 = vpop.f32.mrf.mxu0 }
 0x1a1   : > { %718 = vst.msk [vmem:[%s1378_s26 + $0x8] sm:$0xff] %vm716_vm0, %v628_v14 }
 0x1a2   : > { %v632_v16 = vpop.f32.mrf.mxu0 }
 0x1a3   : > { %v633_v17 = vadd.f32 %v1371_v11, %v632_v16 }
 0x1a4   : > { %v985_v18 = vpop.f32.mrf.mxu0 }
 0x1a5   : > { %719 = vst.msk [vmem:[%s1378_s26 + $0x10] sm:$0xff] %vm716_vm0, %v633_v17 }
 0x1a6   : > { %v637_v19 = vpop.f32.mrf.mxu1 }
 0x1a7   : > { %v638_v20 = vadd.f32 %v1371_v11, %v637_v19 }
 0x1a8   : > { %v988_v21 = vpop.f32.mrf.mxu1 }
 0x1a9   : > { %720 = vst.msk [vmem:[%s1378_s26 + $0x18] sm:$0xff] %vm716_vm0, %v638_v20 }
 0x1aa   : > { %v642_v22 = vpop.f32.mrf.mxu1 }
 0x1ab   : > { %v643_v23 = vadd.f32 %v1371_v11, %v642_v22 }
 0x1ac   : > { %v991_v24 = vpop.f32.mrf.mxu1 }
 0x1ad   : > { %721 = vst.msk [vmem:[%s1378_s26 + $0x20] sm:$0xff] %vm716_vm0, %v643_v23 }
 0x1ae   : > { %v647_v25 = vpop.f32.mrf.mxu1 }
 0x1af   : > { %v648_v26 = vadd.f32 %v1371_v11, %v647_v25 }
 0x1b0   : > { %v994_v27 = vpop.f32.mrf.mxu1 }
 0x1b1   : > { %722 = vst.msk [vmem:[%s1378_s26 + $0x28] sm:$0xff] %vm716_vm0, %v648_v26 }
 0x1b2   : > { %v652_v28 = vpop.f32.mrf.mxu1 }
 0x1b3   : > { %v653_v29 = vadd.f32 %v1371_v11, %v652_v28 }
 0x1b4   : > { %v997_v30 = vpop.f32.mrf.mxu1 }
 0x1b5   : > { %723 = vst.msk [vmem:[%s1378_s26 + $0x30] sm:$0xff] %vm716_vm0, %v653_v29 }
 0x1b6   : > { %v657_v31 = vpop.f32.mrf.mxu1 }
 0x1b7   : > { %v658_v32 = vadd.f32 %v1371_v11, %v657_v31 }
 0x1b8   : > { %v1000_v33 = vpop.f32.mrf.mxu1 }
 0x1b9   : > { %724 = vst.msk [vmem:[%s1378_s26 + $0x38] sm:$0xff] %vm716_vm0, %v658_v32 }
 0x1ba   : > { %v662_v34 = vpop.f32.mrf.mxu1 }
 0x1bb   : > { %v663_v35 = vadd.f32 %v1371_v11, %v662_v34 }
 0x1bc   : > { %v1003_v36 = vpop.f32.mrf.mxu1 }
 0x1bd   : > { %725 = vst.msk [vmem:[%s1378_s26 + $0x40] sm:$0xff] %vm716_vm0, %v663_v35 }
 0x1be   : > { %v667_v37 = vpop.f32.mrf.mxu1 }
 0x1bf   : > { %v668_v38 = vadd.f32 %v1371_v11, %v667_v37 }
 0x1c0   : > { %v1006_v39 = vpop.f32.mrf.mxu1 }
 0x1c1   : > { %726 = vst.msk [vmem:[%s1378_s26 + $0x48] sm:$0xff] %vm716_vm0, %v668_v38 }
 0x1c2   : > { %v672_v41 = vpop.f32.mrf.mxu1 }
 0x1c3   : > { %v673_v42 = vadd.f32 %v1371_v11, %v672_v41 }
 0x1c4   : > { %v1009_v43 = vpop.f32.mrf.mxu1 }
 0x1c5   : > { %727 = vst.msk [vmem:[%s1378_s26 + $0x50] sm:$0xff] %vm716_vm0, %v673_v42 }
 0x1c6   : > { %v677_v44 = vpop.f32.mrf.mxu1 }
 0x1c7   : > { %v678_v45 = vadd.f32 %v1371_v11, %v677_v44 }
 0x1c8   : > { %v1012_v46 = vpop.f32.mrf.mxu1 }
 0x1c9   : > { %728 = vst.msk [vmem:[%s1378_s26 + $0x58] sm:$0xff] %vm716_vm0, %v678_v45 }
 0x1ca   : > { %v682_v47 = vpop.f32.mrf.mxu1 }
 0x1cb   : > { %v683_v48 = vadd.f32 %v1371_v11, %v682_v47 }
 0x1cc   : > { %v1015_v49 = vpop.f32.mrf.mxu1 }
 0x1cd   : > { %729 = vst.msk [vmem:[%s1378_s26 + $0x60] sm:$0xff] %vm716_vm0, %v683_v48 }
 0x1ce   : > { %v687_v50 = vpop.f32.mrf.mxu1 }
 0x1cf   : > { %v688_v51 = vadd.f32 %v1371_v11, %v687_v50 }
 0x1d0   : > { %v1018_v52 = vpop.f32.mrf.mxu1 }
 0x1d1   : > { %730 = vst.msk [vmem:[%s1378_s26 + $0x68] sm:$0xff] %vm716_vm0, %v688_v51 }
 0x1d2   : > { %v692_v53 = vpop.f32.mrf.mxu1 }
 0x1d3   : > { %v693_v54 = vadd.f32 %v1371_v11, %v692_v53 }
 0x1d4   : > { %v1021_v55 = vpop.f32.mrf.mxu1 }
 0x1d5   : > { %731 = vst.msk [vmem:[%s1378_s26 + $0x70] sm:$0xff] %vm716_vm0, %v693_v54 }
 0x1d6   : > { %v697_v56 = vpop.f32.mrf.mxu1 }
 0x1d7   : > { %v698_v57 = vadd.f32 %v1371_v11, %v697_v56 }
 0x1d8   : > { %v1024_v58 = vpop.f32.mrf.mxu1 }
 0x1d9   : > { %732 = vst.msk [vmem:[%s1378_s26 + $0x78] sm:$0xff] %vm716_vm0, %v698_v57 }
 0x1da   : > { %v702_v59 = vpop.f32.mrf.mxu1 }
 0x1db   : > { %v703_v60 = vadd.f32 %v1371_v11, %v702_v59 }
 0x1dc   : > { %v1027_v61 = vpop.f32.mrf.mxu1 }
 0x1dd   : > { %733 = vst.msk [vmem:[%s1378_s26 + $0x80] sm:$0xff] %vm716_vm0, %v703_v60 }
 0x1de   : > { %v707_v62 = vpop.f32.mrf.mxu1 }
 0x1df   : > { %v708_v63 = vadd.f32 %v1371_v11, %v707_v62 }
 0x1e0   : > { %v1030_v0 = vpop.f32.mrf.mxu1 }
 0x1e1   : > { %734 = vst.msk [vmem:[%s1378_s26 + $0x88] sm:$0xff] %vm716_vm0, %v708_v63 }
 0x1e2   : > { %v712_v2 = vpop.f32.mrf.mxu1 }
 0x1e3   : > { %v713_v3 = vadd.f32 %v1371_v11, %v712_v2 }
 0x1e4   : > { %v1033_v4 = vpop.f32.mrf.mxu1 }
 0x1e5   : > { %735 = vst.msk [vmem:[%s1378_s26 + $0x90] sm:$0xff] %vm716_vm0, %v713_v3 }
 0x1e6 PF: > { %s15_s18 = sadd.s32 1, %s1082_s18  }
 0x1e7   : > { %p12_p4 = scmp.ge.s32.totalorder %s15_s18, 4  }
 0x1e9   :  { %14 = sbr.rel (!%p12_p4) target bundleno = 1 (0x1), region = 70 }

</bundles_post_ra>
